<compile_context>
chip_gen: v7x
topology: tpu7x:2x2x1
jax: 0.10.0
libtpu: 0.0.40
codegen_flags: <defaults>
</compile_context>

<pallas_src>
import jax
import jax.numpy as jnp
from jax.experimental import pallas as pl
from jax.experimental.pallas import tpu as pltpu


# ------------------------------ fused kernel -------------------------------

def _make_decoder_kernel(n_layers, hidden_dim):
    """Builds the fused decoder-step kernel for a fixed (static) n_layers."""

    def kernel(tokens_ref, emb_ref, hidden_ref, cell_ref, *args):
        w_refs = args[0:n_layers]                  # (in_dim_l + H, 4H) bf16
        b_refs = args[n_layers:2 * n_layers]       # (1, 4H) f32
        fc_w_ref = args[2 * n_layers]              # (H, V) bf16
        fc_b_ref = args[2 * n_layers + 1]          # (1, V) f32
        pred_ref = args[2 * n_layers + 2]          # (B, V) f32
        new_h_ref = args[2 * n_layers + 3]         # (n_layers, B, H) f32
        new_c_ref = args[2 * n_layers + 4]         # (n_layers, B, H) f32

        B = tokens_ref.shape[0]
        V, _ = emb_ref.shape
        H = hidden_dim

        # ---- embedding lookup, fused in-kernel as a one-hot MXU matmul ----
        # (exact gather for in-range tokens; PyTorch would raise on OOB).
        tok = tokens_ref[...]                                       # (B, 1) i32
        vocab_ids = jax.lax.broadcasted_iota(jnp.int32, (B, V), 1)  # (B, V)
        one_hot = (tok == vocab_ids).astype(emb_ref.dtype)          # (B, V) bf16
        x = jnp.dot(one_hot, emb_ref[...],
                    preferred_element_type=jnp.float32)             # (B, E) f32
        # dropout(embedded) is identity in eval mode.

        # ------------------------- stacked LSTM step ------------------------
        # gates = [x, h] @ W_cat^T + (b_ih + b_hh); split order i, f, g, o
        # (matches PyTorch nn.LSTM exactly).
        for layer in range(n_layers):
            h = hidden_ref[layer]                                   # (B, H) f32
            c = cell_ref[layer]                                     # (B, H) f32
            xh = jnp.concatenate([x, h], axis=1).astype(w_refs[layer].dtype)
            gates = (jnp.dot(xh, w_refs[layer][...],
                             preferred_element_type=jnp.float32)
                     + b_refs[layer][...])                          # (B, 4H) f32

            i_g = jax.nn.sigmoid(gates[:, 0 * H:1 * H])
            f_g = jax.nn.sigmoid(gates[:, 1 * H:2 * H])
            g_g = jnp.tanh(gates[:, 2 * H:3 * H])
            o_g = jax.nn.sigmoid(gates[:, 3 * H:4 * H])

            c_new = f_g * c + i_g * g_g
            h_new = o_g * jnp.tanh(c_new)

            new_h_ref[layer] = h_new
            new_c_ref[layer] = c_new
            x = h_new  # inter-layer dropout is identity in eval mode

        # ---------------------------- projection ----------------------------
        pred_ref[...] = (jnp.dot(x.astype(fc_w_ref.dtype), fc_w_ref[...],
                                 preferred_element_type=jnp.float32)
                         + fc_b_ref[...])

    return kernel


# ------------------------------ thin wrapper --------------------------------

_VMEM = pl.BlockSpec(memory_space=pltpu.MemorySpace.VMEM)


def decoder_forward(tokens, hidden, cell, params):
    """Mirrors Decoder.forward:
       input.unsqueeze(0) -> embedding -> dropout(eval=id) -> LSTM step -> fc(squeeze(0))
    Single fused pallas_call; new hidden/cell alias the input state buffers.
    """
    n_layers, B, H = hidden.shape
    V, _ = params["embedding"].shape

    tokens2d = tokens.reshape(B, 1).astype(jnp.int32)
    w_cats = [w for (w, _) in params["layers"]]
    biases = [b for (_, b) in params["layers"]]

    n_inputs = 4 + 2 * n_layers + 2
    out_shapes = (
        jax.ShapeDtypeStruct((B, V), jnp.float32),            # prediction
        jax.ShapeDtypeStruct((n_layers, B, H), jnp.float32),  # new hidden
        jax.ShapeDtypeStruct((n_layers, B, H), jnp.float32),  # new cell
    )

    prediction, new_hidden, new_cell = pl.pallas_call(
        _make_decoder_kernel(n_layers, H),
        out_shape=out_shapes,
        in_specs=[_VMEM] * n_inputs,
        out_specs=(_VMEM, _VMEM, _VMEM),
        # hidden (input 2) -> new_hidden (output 1), cell (input 3) -> new_cell (output 2)
        input_output_aliases={2: 1, 3: 2},
    )(tokens2d, params["embedding"], hidden, cell,
      *w_cats, *biases, params["fc_w_t"], params["fc_b"])

    return prediction, new_hidden, new_cell


# ------------------------------ parameters ----------------------------------

def init_params(key, output_dim, embed_dim, hidden_dim, n_layers):
    """Deterministic synthetic parameters (PyTorch-style uniform init),
    packed for the fused kernel: bf16 weights, pre-concatenated W_ih/W_hh,
    pre-summed biases, pre-transposed matrices."""
    keys = jax.random.split(key, 3 + 4 * n_layers)
    k_iter = iter(keys)
    bound = 1.0 / jnp.sqrt(hidden_dim)

    params = {
        "embedding": (jax.random.normal(next(k_iter), (output_dim, embed_dim),
                                        dtype=jnp.float32) * 0.1
                      ).astype(jnp.bfloat16),
        "layers": [],
    }
    for layer in range(n_layers):
        in_dim = embed_dim if layer == 0 else hidden_dim
        wih = jax.random.uniform(next(k_iter), (4 * hidden_dim, in_dim),
                                 minval=-bound, maxval=bound, dtype=jnp.float32)
        whh = jax.random.uniform(next(k_iter), (4 * hidden_dim, hidden_dim),
                                 minval=-bound, maxval=bound, dtype=jnp.float32)
        bih = jax.random.uniform(next(k_iter), (4 * hidden_dim,),
                                 minval=-bound, maxval=bound, dtype=jnp.float32)
        bhh = jax.random.uniform(next(k_iter), (4 * hidden_dim,),
                                 minval=-bound, maxval=bound, dtype=jnp.float32)
        w_cat_t = jnp.concatenate([wih, whh], axis=1).T.astype(jnp.bfloat16)
        bias = (bih + bhh).reshape(1, 4 * hidden_dim)
        params["layers"].append((w_cat_t, bias))

    fc_w = jax.random.uniform(next(k_iter), (output_dim, hidden_dim),
                              minval=-bound, maxval=bound, dtype=jnp.float32)
    fc_b = jax.random.uniform(next(k_iter), (output_dim,),
                              minval=-bound, maxval=bound, dtype=jnp.float32)
    params["fc_w_t"] = fc_w.T.astype(jnp.bfloat16)
    params["fc_b"] = fc_b.reshape(1, output_dim)
    return params


# ------------------------- pure-JAX reference (f32) --------------------------

def decoder_reference(tokens, hidden, cell, params):
    H = hidden.shape[-1]
    x = params["embedding"].astype(jnp.float32)[tokens]  # (B, E)
    new_h, new_c = [], []
    for layer, (w_cat_t, b) in enumerate(params["layers"]):
        xh = jnp.concatenate([x, hidden[layer]], axis=1)
        gates = xh @ w_cat_t.astype(jnp.float32) + b
        i_g = jax.nn.sigmoid(gates[:, 0 * H:1 * H])
        f_g = jax.nn.sigmoid(gates[:, 1 * H:2 * H])
        g_g = jnp.tanh(gates[:, 2 * H:3 * H])
        o_g = jax.nn.sigmoid(gates[:, 3 * H:4 * H])
        c_new = f_g * cell[layer] + i_g * g_g
        h_new = o_g * jnp.tanh(c_new)
        new_h.append(h_new)
        new_c.append(c_new)
        x = h_new
    pred = x @ params["fc_w_t"].astype(jnp.float32) + params["fc_b"]
    return pred, jnp.stack(new_h), jnp.stack(new_c)


# --------------------------------- driver ------------------------------------

if __name__ == "__main__":
    # Lane-dense demo shapes (multiples of 128 on the lane axes).
    OUTPUT_DIM = 256   # vocab size V
    EMBED_DIM = 128
    HIDDEN_DIM = 128
    N_LAYERS = 2
    BATCH = 8

    key = jax.random.PRNGKey(0)
    k_params, k_tok, k_h, k_c = jax.random.split(key, 4)

    params = init_params(k_params, OUTPUT_DIM, EMBED_DIM, HIDDEN_DIM, N_LAYERS)

    tokens = jax.random.randint(k_tok, (BATCH,), 0, OUTPUT_DIM, dtype=jnp.int32)
    hidden = jax.random.normal(k_h, (N_LAYERS, BATCH, HIDDEN_DIM),
                               dtype=jnp.float32) * 0.1
    cell = jax.random.normal(k_c, (N_LAYERS, BATCH, HIDDEN_DIM),
                             dtype=jnp.float32) * 0.1

    # Reference computed first (hidden/cell are donated to the kernel call).
    ref_pred, ref_h, ref_c = decoder_reference(tokens, hidden, cell, params)

    decoder_step = jax.jit(decoder_forward, donate_argnums=(1, 2))
    prediction, new_hidden, new_cell = decoder_step(tokens, hidden, cell, params)
    jax.block_until_ready((prediction, new_hidden, new_cell))

    assert prediction.shape == (BATCH, OUTPUT_DIM)
    assert new_hidden.shape == (N_LAYERS, BATCH, HIDDEN_DIM)
    assert new_cell.shape == (N_LAYERS, BATCH, HIDDEN_DIM)
    assert prediction.dtype == jnp.float32

    # bf16 matmul operands with f32 accumulation -> loose tolerance vs f32 ref.
    assert jnp.allclose(prediction, ref_pred, atol=2e-2, rtol=2e-2)
    assert jnp.allclose(new_hidden, ref_h, atol=2e-2, rtol=2e-2)
    assert jnp.allclose(new_cell, ref_c, atol=2e-2, rtol=2e-2)

    print("KERNEL_OK")
</pallas_src>

<mosaic_0001>
module attributes {stable_mosaic.version = 11 : i64} {
  func.func @kernel(%arg0: memref<8x1xi32, #tpu.memory_space<vmem>>, %arg1: memref<256x128xbf16, #tpu.memory_space<vmem>>, %arg2: memref<2x8x128xf32, #tpu.memory_space<vmem>>, %arg3: memref<2x8x128xf32, #tpu.memory_space<vmem>>, %arg4: memref<256x512xbf16, #tpu.memory_space<vmem>>, %arg5: memref<256x512xbf16, #tpu.memory_space<vmem>>, %arg6: memref<1x512xf32, #tpu.memory_space<vmem>>, %arg7: memref<1x512xf32, #tpu.memory_space<vmem>>, %arg8: memref<128x256xbf16, #tpu.memory_space<vmem>>, %arg9: memref<1x256xf32, #tpu.memory_space<vmem>>, %arg10: memref<8x256xf32, #tpu.memory_space<vmem>>, %arg11: memref<2x8x128xf32, #tpu.memory_space<vmem>>, %arg12: memref<2x8x128xf32, #tpu.memory_space<vmem>>) attributes {dimension_semantics = [], scalar_prefetch = 0 : i64, scratch_operands = 0 : i64, tpu.core_type = #tpu.core_type<tc>} {
    %c0 = arith.constant 0 : index
    %c0_0 = arith.constant 0 : index
    %0 = vector.load %arg0[%c0, %c0_0] : memref<8x1xi32, #tpu.memory_space<vmem>>, vector<8x1xi32>
    %1 = tpu.iota {dimensions = array<i32: 1>} : vector<8x256xi32>
    %2 = vector.broadcast %0 : vector<8x1xi32> to vector<8x256xi32>
    %3 = arith.cmpi eq, %2, %1 : vector<8x256xi32>
    %4 = arith.extui %3 : vector<8x256xi1> to vector<8x256xi32>
    %5 = arith.sitofp %4 : vector<8x256xi32> to vector<8x256xf32>
    %6 = arith.truncf %5 : vector<8x256xf32> to vector<8x256xbf16>
    %c0_1 = arith.constant 0 : index
    %c0_2 = arith.constant 0 : index
    %7 = vector.load %arg1[%c0_1, %c0_2] : memref<256x128xbf16, #tpu.memory_space<vmem>>, vector<256x128xbf16>
    %cst = arith.constant dense<0.000000e+00> : vector<8x128xf32>
    %8 = tpu.matmul %6, %7, %cst {dimension_numbers = #tpu.dot_dimension_numbers<[1], [0], [0], [1], [0, 0, 1, 1], [], []>} : vector<8x256xbf16>, vector<256x128xbf16>, vector<8x128xf32> -> vector<8x128xf32>
    %c0_3 = arith.constant 0 : index
    %c0_4 = arith.constant 0 : index
    %c0_5 = arith.constant 0 : index
    %9 = vector.load %arg2[%c0_3, %c0_4, %c0_5] : memref<2x8x128xf32, #tpu.memory_space<vmem>>, vector<1x8x128xf32>
    %10 = vector.shape_cast %9 : vector<1x8x128xf32> to vector<8x128xf32>
    %c0_6 = arith.constant 0 : index
    %c0_7 = arith.constant 0 : index
    %c0_8 = arith.constant 0 : index
    %11 = vector.load %arg3[%c0_6, %c0_7, %c0_8] : memref<2x8x128xf32, #tpu.memory_space<vmem>>, vector<1x8x128xf32>
    %12 = vector.shape_cast %11 : vector<1x8x128xf32> to vector<8x128xf32>
    %13 = tpu.concatenate %8, %10 in 1 : vector<8x128xf32>, vector<8x128xf32> -> vector<8x256xf32>
    %14 = arith.truncf %13 : vector<8x256xf32> to vector<8x256xbf16>
    %c0_9 = arith.constant 0 : index
    %c0_10 = arith.constant 0 : index
    %15 = vector.load %arg4[%c0_9, %c0_10] : memref<256x512xbf16, #tpu.memory_space<vmem>>, vector<256x512xbf16>
    %cst_11 = arith.constant dense<0.000000e+00> : vector<8x512xf32>
    %16 = tpu.matmul %14, %15, %cst_11 {dimension_numbers = #tpu.dot_dimension_numbers<[1], [0], [0], [1], [0, 0, 1, 1], [], []>} : vector<8x256xbf16>, vector<256x512xbf16>, vector<8x512xf32> -> vector<8x512xf32>
    %c0_12 = arith.constant 0 : index
    %c0_13 = arith.constant 0 : index
    %17 = vector.load %arg6[%c0_12, %c0_13] : memref<1x512xf32, #tpu.memory_space<vmem>>, vector<1x512xf32>
    %18 = vector.broadcast %17 : vector<1x512xf32> to vector<8x512xf32>
    %19 = arith.addf %16, %18 : vector<8x512xf32>
    %20 = vector.extract_strided_slice %19 {offsets = [0, 0], sizes = [8, 128], strides = [1, 1]} : vector<8x512xf32> to vector<8x128xf32>
    %21 = arith.negf %20 : vector<8x128xf32>
    %22 = math.exp %21 : vector<8x128xf32>
    %cst_14 = arith.constant 1.000000e+00 : f32
    %23 = vector.broadcast %cst_14 : f32 to vector<8x128xf32>
    %24 = arith.addf %23, %22 : vector<8x128xf32>
    %25 = arith.divf %23, %24 : vector<8x128xf32>
    %26 = vector.extract_strided_slice %19 {offsets = [0, 128], sizes = [8, 128], strides = [1, 1]} : vector<8x512xf32> to vector<8x128xf32>
    %27 = arith.negf %26 : vector<8x128xf32>
    %28 = math.exp %27 : vector<8x128xf32>
    %cst_15 = arith.constant 1.000000e+00 : f32
    %29 = vector.broadcast %cst_15 : f32 to vector<8x128xf32>
    %30 = arith.addf %29, %28 : vector<8x128xf32>
    %31 = arith.divf %29, %30 : vector<8x128xf32>
    %32 = vector.extract_strided_slice %19 {offsets = [0, 256], sizes = [8, 128], strides = [1, 1]} : vector<8x512xf32> to vector<8x128xf32>
    %33 = math.tanh %32 : vector<8x128xf32>
    %34 = vector.extract_strided_slice %19 {offsets = [0, 384], sizes = [8, 128], strides = [1, 1]} : vector<8x512xf32> to vector<8x128xf32>
    %35 = arith.negf %34 : vector<8x128xf32>
    %36 = math.exp %35 : vector<8x128xf32>
    %cst_16 = arith.constant 1.000000e+00 : f32
    %37 = vector.broadcast %cst_16 : f32 to vector<8x128xf32>
    %38 = arith.addf %37, %36 : vector<8x128xf32>
    %39 = arith.divf %37, %38 : vector<8x128xf32>
    %40 = arith.mulf %31, %12 : vector<8x128xf32>
    %41 = arith.mulf %25, %33 : vector<8x128xf32>
    %42 = arith.addf %40, %41 : vector<8x128xf32>
    %43 = math.tanh %42 : vector<8x128xf32>
    %44 = arith.mulf %39, %43 : vector<8x128xf32>
    %c0_17 = arith.constant 0 : index
    %c0_18 = arith.constant 0 : index
    %c0_19 = arith.constant 0 : index
    %45 = vector.load %arg11[%c0_17, %c0_18, %c0_19] : memref<2x8x128xf32, #tpu.memory_space<vmem>>, vector<1x8x128xf32>
    %46 = vector.shape_cast %45 : vector<1x8x128xf32> to vector<8x128xf32>
    %47 = vector.shape_cast %44 : vector<8x128xf32> to vector<1x8x128xf32>
    tpu.vector_store %arg11[%c0_17, %c0_18, %c0_19], %47 {strides = array<i32>} : memref<2x8x128xf32, #tpu.memory_space<vmem>>, vector<1x8x128xf32>,
    %c0_20 = arith.constant 0 : index
    %c0_21 = arith.constant 0 : index
    %c0_22 = arith.constant 0 : index
    %48 = vector.load %arg12[%c0_20, %c0_21, %c0_22] : memref<2x8x128xf32, #tpu.memory_space<vmem>>, vector<1x8x128xf32>
    %49 = vector.shape_cast %48 : vector<1x8x128xf32> to vector<8x128xf32>
    %50 = vector.shape_cast %42 : vector<8x128xf32> to vector<1x8x128xf32>
    tpu.vector_store %arg12[%c0_20, %c0_21, %c0_22], %50 {strides = array<i32>} : memref<2x8x128xf32, #tpu.memory_space<vmem>>, vector<1x8x128xf32>,
    %c1 = arith.constant 1 : index
    %c0_23 = arith.constant 0 : index
    %c0_24 = arith.constant 0 : index
    %51 = vector.load %arg2[%c1, %c0_23, %c0_24] : memref<2x8x128xf32, #tpu.memory_space<vmem>>, vector<1x8x128xf32>
    %52 = vector.shape_cast %51 : vector<1x8x128xf32> to vector<8x128xf32>
    %c1_25 = arith.constant 1 : index
    %c0_26 = arith.constant 0 : index
    %c0_27 = arith.constant 0 : index
    %53 = vector.load %arg3[%c1_25, %c0_26, %c0_27] : memref<2x8x128xf32, #tpu.memory_space<vmem>>, vector<1x8x128xf32>
    %54 = vector.shape_cast %53 : vector<1x8x128xf32> to vector<8x128xf32>
    %55 = tpu.concatenate %44, %52 in 1 : vector<8x128xf32>, vector<8x128xf32> -> vector<8x256xf32>
    %56 = arith.truncf %55 : vector<8x256xf32> to vector<8x256xbf16>
    %c0_28 = arith.constant 0 : index
    %c0_29 = arith.constant 0 : index
    %57 = vector.load %arg5[%c0_28, %c0_29] : memref<256x512xbf16, #tpu.memory_space<vmem>>, vector<256x512xbf16>
    %cst_30 = arith.constant dense<0.000000e+00> : vector<8x512xf32>
    %58 = tpu.matmul %56, %57, %cst_30 {dimension_numbers = #tpu.dot_dimension_numbers<[1], [0], [0], [1], [0, 0, 1, 1], [], []>} : vector<8x256xbf16>, vector<256x512xbf16>, vector<8x512xf32> -> vector<8x512xf32>
    %c0_31 = arith.constant 0 : index
    %c0_32 = arith.constant 0 : index
    %59 = vector.load %arg7[%c0_31, %c0_32] : memref<1x512xf32, #tpu.memory_space<vmem>>, vector<1x512xf32>
    %60 = vector.broadcast %59 : vector<1x512xf32> to vector<8x512xf32>
    %61 = arith.addf %58, %60 : vector<8x512xf32>
    %62 = vector.extract_strided_slice %61 {offsets = [0, 0], sizes = [8, 128], strides = [1, 1]} : vector<8x512xf32> to vector<8x128xf32>
    %63 = arith.negf %62 : vector<8x128xf32>
    %64 = math.exp %63 : vector<8x128xf32>
    %cst_33 = arith.constant 1.000000e+00 : f32
    %65 = vector.broadcast %cst_33 : f32 to vector<8x128xf32>
    %66 = arith.addf %65, %64 : vector<8x128xf32>
    %67 = arith.divf %65, %66 : vector<8x128xf32>
    %68 = vector.extract_strided_slice %61 {offsets = [0, 128], sizes = [8, 128], strides = [1, 1]} : vector<8x512xf32> to vector<8x128xf32>
    %69 = arith.negf %68 : vector<8x128xf32>
    %70 = math.exp %69 : vector<8x128xf32>
    %cst_34 = arith.constant 1.000000e+00 : f32
    %71 = vector.broadcast %cst_34 : f32 to vector<8x128xf32>
    %72 = arith.addf %71, %70 : vector<8x128xf32>
    %73 = arith.divf %71, %72 : vector<8x128xf32>
    %74 = vector.extract_strided_slice %61 {offsets = [0, 256], sizes = [8, 128], strides = [1, 1]} : vector<8x512xf32> to vector<8x128xf32>
    %75 = math.tanh %74 : vector<8x128xf32>
    %76 = vector.extract_strided_slice %61 {offsets = [0, 384], sizes = [8, 128], strides = [1, 1]} : vector<8x512xf32> to vector<8x128xf32>
    %77 = arith.negf %76 : vector<8x128xf32>
    %78 = math.exp %77 : vector<8x128xf32>
    %cst_35 = arith.constant 1.000000e+00 : f32
    %79 = vector.broadcast %cst_35 : f32 to vector<8x128xf32>
    %80 = arith.addf %79, %78 : vector<8x128xf32>
    %81 = arith.divf %79, %80 : vector<8x128xf32>
    %82 = arith.mulf %73, %54 : vector<8x128xf32>
    %83 = arith.mulf %67, %75 : vector<8x128xf32>
    %84 = arith.addf %82, %83 : vector<8x128xf32>
    %85 = math.tanh %84 : vector<8x128xf32>
    %86 = arith.mulf %81, %85 : vector<8x128xf32>
    %c1_36 = arith.constant 1 : index
    %c0_37 = arith.constant 0 : index
    %c0_38 = arith.constant 0 : index
    %87 = vector.load %arg11[%c1_36, %c0_37, %c0_38] : memref<2x8x128xf32, #tpu.memory_space<vmem>>, vector<1x8x128xf32>
    %88 = vector.shape_cast %87 : vector<1x8x128xf32> to vector<8x128xf32>
    %89 = vector.shape_cast %86 : vector<8x128xf32> to vector<1x8x128xf32>
    tpu.vector_store %arg11[%c1_36, %c0_37, %c0_38], %89 {strides = array<i32>} : memref<2x8x128xf32, #tpu.memory_space<vmem>>, vector<1x8x128xf32>,
    %c1_39 = arith.constant 1 : index
    %c0_40 = arith.constant 0 : index
    %c0_41 = arith.constant 0 : index
    %90 = vector.load %arg12[%c1_39, %c0_40, %c0_41] : memref<2x8x128xf32, #tpu.memory_space<vmem>>, vector<1x8x128xf32>
    %91 = vector.shape_cast %90 : vector<1x8x128xf32> to vector<8x128xf32>
    %92 = vector.shape_cast %84 : vector<8x128xf32> to vector<1x8x128xf32>
    tpu.vector_store %arg12[%c1_39, %c0_40, %c0_41], %92 {strides = array<i32>} : memref<2x8x128xf32, #tpu.memory_space<vmem>>, vector<1x8x128xf32>,
    %93 = arith.truncf %86 : vector<8x128xf32> to vector<8x128xbf16>
    %c0_42 = arith.constant 0 : index
    %c0_43 = arith.constant 0 : index
    %94 = vector.load %arg8[%c0_42, %c0_43] : memref<128x256xbf16, #tpu.memory_space<vmem>>, vector<128x256xbf16>
    %cst_44 = arith.constant dense<0.000000e+00> : vector<8x256xf32>
    %95 = tpu.matmul %93, %94, %cst_44 {dimension_numbers = #tpu.dot_dimension_numbers<[1], [0], [0], [1], [0, 0, 1, 1], [], []>} : vector<8x128xbf16>, vector<128x256xbf16>, vector<8x256xf32> -> vector<8x256xf32>
    %c0_45 = arith.constant 0 : index
    %c0_46 = arith.constant 0 : index
    %96 = vector.load %arg9[%c0_45, %c0_46] : memref<1x256xf32, #tpu.memory_space<vmem>>, vector<1x256xf32>
    %97 = vector.broadcast %96 : vector<1x256xf32> to vector<8x256xf32>
    %98 = arith.addf %95, %97 : vector<8x256xf32>
    %c0_47 = arith.constant 0 : index
    %c0_48 = arith.constant 0 : index
    %99 = vector.load %arg10[%c0_47, %c0_48] : memref<8x256xf32, #tpu.memory_space<vmem>>, vector<8x256xf32>
    tpu.vector_store %arg10[%c0_47, %c0_48], %98 {strides = array<i32>} : memref<8x256xf32, #tpu.memory_space<vmem>>, vector<8x256xf32>,
    return
  }
}

</mosaic_0001>

<bundles_post_ra>
// kernel: decoder_forward.1
= control target key start
LH: loop header
LB: loop body
LE: loop exit
PB: predicated region body
PF: predicated region fallthrough
CT: control target
= control target key end

     0   :  { %18 = vsyncpa [#allocation3], 0  ;;  %s2484_s0 = inlined_call_operand.vmem [shape: s32[8,1], index: 0, kind: input, shape index: {}]   ;;  %s2485_s1 = inlined_call_operand.hbm [shape: bf16[256,128], index: 1, kind: input, shape index: {}]   ;;  %s2486_s2 = inlined_call_operand.hbm [shape: f32[2,8,128], index: 2, kind: input, shape index: {}, may-alias: {2,11}]   ;;  %s2487_s3 = inlined_call_operand.hbm [shape: f32[2,8,128], index: 3, kind: input, shape index: {}, may-alias: {3,12}]   ;;  %s2488_s4 = inlined_call_operand.hbm [shape: bf16[256,512], index: 4, kind: input, shape index: {}]   ;;  %s2489_s5 = inlined_call_operand.hbm [shape: bf16[256,512], index: 5, kind: input, shape index: {}]   ;;  %s2490_s6 = inlined_call_operand.vmem [shape: f32[1,512], index: 6, kind: input, shape index: {}]   ;;  %s2491_s7 = inlined_call_operand.vmem [shape: f32[1,512], index: 7, kind: input, shape index: {}]   ;;  %s2492_s8 = inlined_call_operand.hbm [shape: bf16[128,256], index: 8, kind: input, shape index: {}]   ;;  %s2493_s9 = inlined_call_operand.vmem [shape: f32[1,256], index: 9, kind: input, shape index: {}]   ;;  %s2494_s10 = inlined_call_operand.hbm [shape: f32[8,256], index: 10, kind: output, shape index: {0}]   ;;  %s2495_s11 = inlined_call_operand.hbm [shape: f32[2,8,128], index: 11, kind: output, shape index: {1}, may-alias: {2,11}]   ;;  %s2496_s12 = inlined_call_operand.hbm [shape: f32[2,8,128], index: 12, kind: output, shape index: {2}, may-alias: {3,12}]  }
   0x1   :  { %19 = vsyncpa [#allocation6], 0 }
   0x2   :  { %20 = vsyncpa [#allocation9], 0 }
   0x3   :  { %21 = vsyncpa [#allocation12], 0 }
   0x4   :  { %22 = vsyncpa [#allocation4], 0 }
   0x5   :  { %23 = vsyncpa [#allocation15], 0  ;;  %s2233_s21 = smov [#allocation5]   ;;  %s2023_s25 = scalar_lea.hbm %s2486_s2, 256 }
   0x6   :  { %s43_s22 = sshll.u32 %s2233_s21, 4  ;;  %p2024_p0 = scmp.ne.s32.totalorder %s2486_s2, %s2023_s25  ;;  %s44_s22 = int_to_ptr.vmem [resolvable:$true] %s43_s22 }
   0x7   :  { %p2027_p1 = scmp.lt.u32.totalorder %s2023_s25, %s2486_s2 }
   0x9   :  { %p2029_p2 = pnand %p2027_p1, %p2024_p0 }
   0xb   :  { %2032 = shalt.err (!%p2029_p2)
}
   0xc   :  { %s2033_s30 = scalar_lea.vmem %s44_s22, 256  ;;  %p2038_p4 = scmp.lt.s32.totalorder %s44_s22, %s44_s22 }
   0xd   :  { %p2034_p3 = scmp.ne.s32.totalorder %s44_s22, %s2033_s30  ;;  %p2039_p5 = scmp.lt.s32.totalorder %s2033_s30, %s2033_s30 }
   0xf   :  { %p2040_p6 = por %p2039_p5, %p2038_p4 }
  0x11   :  { %p2041_p7 = pnand %p2040_p6, %p2034_p3 }
  0x13   :  { %2044 = shalt.err (!%p2041_p7)
}
  0x14   :  { %s2234_s13 = smov 128   ;;  %s2235_s14 = smov 8  }
  0x15   :  { %49 = dma.hbm_to_vmem [thread:$0]  %s2486_s2, 256, %s44_s22, [#allocation6], %s2234_s13, %s2234_s13, %s2235_s14  }
  0x16   :  { %s2236_s17 = smov [#allocation8]   ;;  %s2045_s21 = scalar_lea.hbm %s2488_s4, 8192 }
  0x17   :  { %s67_s18 = sshll.u32 %s2236_s17, 4  ;;  %p2046_p8 = scmp.ne.s32.totalorder %s2488_s4, %s2045_s21  ;;  %s68_s18 = int_to_ptr.vmem [resolvable:$true] %s67_s18 }
  0x18   :  { %p2049_p9 = scmp.lt.u32.totalorder %s2045_s21, %s2488_s4 }
  0x1a   :  { %p2051_p10 = pnand %p2049_p9, %p2046_p8 }
  0x1c   :  { %2054 = shalt.err (!%p2051_p10)
}
  0x1d   :  { %s2055_s27 = scalar_lea.vmem %s68_s18, 8192  ;;  %p2060_p12 = scmp.lt.s32.totalorder %s68_s18, %s68_s18 }
  0x1e   :  { %p2056_p11 = scmp.ne.s32.totalorder %s68_s18, %s2055_s27  ;;  %p2061_p13 = scmp.lt.s32.totalorder %s2055_s27, %s2055_s27 }
  0x20   :  { %p2062_p0 = por %p2061_p13, %p2060_p12 }
  0x22   :  { %p2063_p1 = pnand %p2062_p0, %p2056_p11 }
  0x24   :  { %2066 = shalt.err (!%p2063_p1)
}
  0x25   :  { %s2237_s2 = smov 256   ;;  %s2238_s22 = smov 16  }
  0x26   :  { %73 = dma.hbm_to_vmem [thread:$0]  %s2488_s4, 8192, %s68_s18, [#allocation9], %s2237_s2, %s2237_s2, %s2238_s22  }
  0x27   :  { %s2239_s30 = smov [#allocation2]   ;;  %s2067_s19 = scalar_lea.hbm %s2485_s1, 2048 }
  0x28   :  { %s31_s15 = sshll.u32 %s2239_s30, 4  ;;  %p2068_p2 = scmp.ne.s32.totalorder %s2485_s1, %s2067_s19  ;;  %s32_s15 = int_to_ptr.vmem [resolvable:$true] %s31_s15 }
  0x29   :  { %p2071_p3 = scmp.lt.u32.totalorder %s2067_s19, %s2485_s1 }
  0x2b   :  { %p2073_p4 = pnand %p2071_p3, %p2068_p2 }
  0x2d   :  { %2076 = shalt.err (!%p2073_p4)
}
  0x2e   :  { %s2077_s25 = scalar_lea.vmem %s32_s15, 2048  ;;  %p2082_p6 = scmp.lt.s32.totalorder %s32_s15, %s32_s15 }
  0x2f   :  { %p2078_p5 = scmp.ne.s32.totalorder %s32_s15, %s2077_s25  ;;  %p2083_p7 = scmp.lt.s32.totalorder %s2077_s25, %s2077_s25 }
  0x31   :  { %p2084_p8 = por %p2083_p7, %p2082_p6 }
  0x33   :  { %p2085_p9 = pnand %p2084_p8, %p2078_p5 }
  0x35   :  { %2088 = shalt.err (!%p2085_p9)
}
  0x36   :  { %s2240_s4 = smov 64   ;;  %s2241_s18 = smov 4  }
  0x37   :  { %37 = dma.hbm_to_vmem [thread:$0]  %s2485_s1, 2048, %s32_s15, [#allocation3], %s2240_s4, %s2240_s4, %s2241_s18  }
  0x38   :  { %s2242_s28 = smov [#allocation7]   ;;  %s2243_s30 = smov [#allocation10]  }
  0x39   :  { %s55_s29 = sshll.u32 %s2242_s28, 4  ;;  %s79_s16 = sshll.u32 %s2243_s30, 4  ;;  %s56_s29 = int_to_ptr.vmem [resolvable:$true] %s55_s29  ;;  %s80_s16 = int_to_ptr.vmem [resolvable:$true] %s79_s16 }
  0x3a   :  { %s2089_s20 = scalar_lea.hbm %s2487_s3, 256 }
  0x3b   :  { %p2090_p10 = scmp.ne.s32.totalorder %s2487_s3, %s2089_s20  ;;  %p2093_p11 = scmp.lt.u32.totalorder %s2089_s20, %s2487_s3 }
  0x3d   :  { %p2095_p12 = pnand %p2093_p11, %p2090_p10 }
  0x3f   :  { %2098 = shalt.err (!%p2095_p12)
}
  0x40   :  { %s2099_s1 = scalar_lea.vmem %s56_s29, 256  ;;  %p2104_p0 = scmp.lt.s32.totalorder %s56_s29, %s56_s29 }
  0x41   :  { %p2100_p13 = scmp.ne.s32.totalorder %s56_s29, %s2099_s1  ;;  %p2105_p1 = scmp.lt.s32.totalorder %s2099_s1, %s2099_s1 }
  0x43   :  { %p2106_p2 = por %p2105_p1, %p2104_p0 }
  0x45   :  { %p2107_p3 = pnand %p2106_p2, %p2100_p13 }
  0x47   :  { %2110 = shalt.err (!%p2107_p3)
}
  0x48   :  { %61 = dma.hbm_to_vmem [thread:$0]  %s2487_s3, 256, %s56_s29, [#allocation6], %s2234_s13, %s2234_s13, %s2235_s14  }
  0x49   :  { %s2111_s27 = scalar_lea.hbm %s2489_s5, 8192 }
  0x4a   :  { %p2112_p4 = scmp.ne.s32.totalorder %s2489_s5, %s2111_s27  ;;  %p2115_p5 = scmp.lt.u32.totalorder %s2111_s27, %s2489_s5 }
  0x4c   :  { %p2117_p6 = pnand %p2115_p5, %p2112_p4 }
  0x4e   :  { %2120 = shalt.err (!%p2117_p6)
}
  0x4f   :  { %s2121_s20 = scalar_lea.vmem %s80_s16, 8192  ;;  %p2126_p8 = scmp.lt.s32.totalorder %s80_s16, %s80_s16 }
  0x50   :  { %p2122_p7 = scmp.ne.s32.totalorder %s80_s16, %s2121_s20  ;;  %p2127_p9 = scmp.lt.s32.totalorder %s2121_s20, %s2121_s20 }
  0x52   :  { %p2128_p10 = por %p2127_p9, %p2126_p8 }
  0x54   :  { %p2129_p11 = pnand %p2128_p10, %p2122_p7 }
  0x56   :  { %2132 = shalt.err (!%p2129_p11)
}
  0x57   :  { %85 = dma.hbm_to_vmem [thread:$0]  %s2489_s5, 8192, %s80_s16, [#allocation9], %s2237_s2, %s2237_s2, %s2238_s22  }
  0x58   :  { %s2244_s21 = smov [#allocation11]   ;;  %s2133_s1 = scalar_lea.hbm %s2492_s8, 2048 }
  0x59   :  { %s95_s23 = sshll.u32 %s2244_s21, 4  ;;  %p2134_p12 = scmp.ne.s32.totalorder %s2492_s8, %s2133_s1  ;;  %s96_s23 = int_to_ptr.vmem [resolvable:$true] %s95_s23 }
  0x5a   :  { %p2137_p13 = scmp.lt.u32.totalorder %s2133_s1, %s2492_s8 }
  0x5c   :  { %p2139_p0 = pnand %p2137_p13, %p2134_p12 }
  0x5e   :  { %2142 = shalt.err (!%p2139_p0)
}
  0x5f   :  { %s2143_s27 = scalar_lea.vmem %s96_s23, 2048  ;;  %p2148_p2 = scmp.lt.s32.totalorder %s96_s23, %s96_s23 }
  0x60   :  { %p2144_p1 = scmp.ne.s32.totalorder %s96_s23, %s2143_s27  ;;  %p2149_p3 = scmp.lt.s32.totalorder %s2143_s27, %s2143_s27 }
  0x62   :  { %p2150_p4 = por %p2149_p3, %p2148_p2 }
  0x64   :  { %p2151_p5 = pnand %p2150_p4, %p2144_p1 }
  0x66   :  { %2154 = shalt.err (!%p2151_p5)
}
  0x67   :  { %101 = dma.hbm_to_vmem [thread:$0]  %s2492_s8, 2048, %s96_s23, [#allocation12], %s2234_s13, %s2234_s13, %s2235_s14  }
  0x68   :  { %2221 = dma.done.wait [#allocation3], 2048  }
  0x69   :  { %2222 = vsyncadd [#allocation3], 4294965248 }
  0x6a   :  { %2223 = dma.done.wait [#allocation6], 512  }
  0x6b   :  { %2224 = vsyncadd [#allocation6], 4294966784 }
  0x6c   :  { %2225 = dma.done.wait [#allocation9], 16384  }
  0x6d   :  { %2226 = vsyncadd [#allocation9], 4294950912 }
  0x6e   :  { %2227 = dma.done.wait [#allocation12], 2048  }
  0x6f   :  { %2228 = vsyncadd [#allocation12], 4294965248  ;;  %v2245_v0 = vmov 0   ;;  %v123_v1 = vld [vmem:[%s2484_s0] sm:$0xff]  ;;  %v1761_v4 = vld [vmem:[#allocation2 + $0x48] sm:$0xff]   ;;  %v124_v49 = vlaneseq }
  0x70   :  { %1758 = vset.pattern.permute.xlu0 %v2245_v0  ;;  %v1759_v2 = vld [vmem:[#allocation2 + $0x40] sm:$0xff]   ;;  %v1762_v5 = vld [vmem:[#allocation2 + $0x8] sm:$0xff]   ;;  %v1763_v6 = vld [vmem:[#allocation2 + $0x50] sm:$0xff]   ;;  %v2246_v55 = vmov 1.0|1.0  }
  0x71   :  { %128 = vperm.xlu0 %1758, %v123_v1   ;;  %v1760_v3 = vld [vmem:[#allocation2] sm:$0xff]   ;;  %1719 = vmatprep.subr.bf16.mxu0 %v1759_v2  ;;  %v1764_v7 = vld [vmem:[#allocation2 + $0x10] sm:$0xff]   ;;  %v1765_v8 = vld [vmem:[#allocation2 + $0x58] sm:$0xff]   ;;  %v125_v50 = vand.u32 127, %v124_v49 }
  0x72   :  { %1720 = vmatpush3.bf16.msra.mxu0 %v1760_v3  ;;  %v1766_v9 = vld [vmem:[#allocation2 + $0x18] sm:$0xff]   ;;  %v1767_v10 = vld [vmem:[#allocation2 + $0x60] sm:$0xff]   ;;  %v1769_v12 = vld [vmem:[#allocation2 + $0x68] sm:$0xff]  }
  0x73   :  { %1721 = vmatprep.subr.bf16.mxu0 %v1761_v4  ;;  %v1768_v11 = vld [vmem:[#allocation2 + $0x20] sm:$0xff]   ;;  %v1770_v16 = vld [vmem:[#allocation2 + $0x28] sm:$0xff]   ;;  %v1771_v17 = vld [vmem:[#allocation2 + $0x70] sm:$0xff]   ;;  %v126_v51 = vadd.s32 128, %v125_v50 }
  0x74   :  { %v1775_v13 = vld [vmem:[#allocation8 + $0x4] ss:$16 sps:$4 sm:$0xff]   ;;  %v1780_v14 = vld [vmem:[#allocation8] ss:$16 sps:$4 sm:$0xff]   ;;  %v1773_v21 = vld [vmem:[#allocation2 + $0x78] sm:$0xff]  }
  0x75   :  { %716 = vmatprep.subr.bf16.mxu1 %v1775_v13  ;;  %v1781_v15 = vld [vmem:[#allocation8 + $0x24] ss:$16 sps:$4 sm:$0xff]   ;;  %v1786_v18 = vld [vmem:[#allocation8 + $0x20] ss:$16 sps:$4 sm:$0xff]   ;;  %v1774_v24 = vld [vmem:[#allocation2 + $0x38] sm:$0xff]  }
  0x76   :  { %1722 = vmatpush3.bf16.msra.mxu0 %v1762_v5  ;;  %717 = vmatpush1.bf16.msra.mxu1 %v1780_v14  ;;  %v1787_v19 = vld [vmem:[#allocation8 + $0x44] ss:$16 sps:$4 sm:$0xff]   ;;  %v1792_v22 = vld [vmem:[#allocation8 + $0x40] ss:$16 sps:$4 sm:$0xff]   ;;  %v1779_v26 = vld [vmem:[#allocation8 + $0xc] ss:$16 sps:$4 sm:$0xff]  }
  0x77   :  { %1723 = vmatprep.subr.bf16.mxu0 %v1763_v6  ;;  %718 = vmatprep.subr.bf16.mxu1 %v1781_v15  ;;  %v1772_v20 = vld [vmem:[#allocation2 + $0x30] sm:$0xff]   ;;  %v1777_v53 = vld [vmem:[#allocation8 + $0x8] ss:$16 sps:$4 sm:$0xff]   ;;  %v1785_v54 = vld [vmem:[#allocation8 + $0x2c] ss:$16 sps:$4 sm:$0xff]  }
  0x78   :  { %v1793_v23 = vld [vmem:[#allocation8 + $0x64] ss:$16 sps:$4 sm:$0xff]   ;;  %v1798_v25 = vld [vmem:[#allocation8 + $0x60] ss:$16 sps:$4 sm:$0xff]   ;;  %v1783_v56 = vld [vmem:[#allocation8 + $0x28] ss:$16 sps:$4 sm:$0xff]  }
  0x79   :  { %v1799_v27 = vld [vmem:[#allocation8 + $0x84] ss:$16 sps:$4 sm:$0xff]   ;;  %v1804_v28 = vld [vmem:[#allocation8 + $0x80] ss:$16 sps:$4 sm:$0xff]   ;;  %v1791_v57 = vld [vmem:[#allocation8 + $0x4c] ss:$16 sps:$4 sm:$0xff]  }
  0x7a   :  { %1724 = vmatpush3.bf16.msra.mxu0 %v1764_v7  ;;  %719 = vmatpush1.bf16.msra.mxu1 %v1786_v18  ;;  %v1805_v29 = vld [vmem:[#allocation8 + $0xa4] ss:$16 sps:$4 sm:$0xff]   ;;  %v1810_v30 = vld [vmem:[#allocation8 + $0xa0] ss:$16 sps:$4 sm:$0xff]   ;;  %v1789_v58 = vld [vmem:[#allocation8 + $0x48] ss:$16 sps:$4 sm:$0xff]  }
  0x7b   :  { %1725 = vmatprep.subr.bf16.mxu0 %v1765_v8  ;;  %720 = vmatprep.subr.bf16.mxu1 %v1787_v19  ;;  %v1811_v31 = vld [vmem:[#allocation8 + $0xc4] ss:$16 sps:$4 sm:$0xff]   ;;  %v1816_v32 = vld [vmem:[#allocation8 + $0xc0] ss:$16 sps:$4 sm:$0xff]   ;;  %v1797_v59 = vld [vmem:[#allocation8 + $0x6c] ss:$16 sps:$4 sm:$0xff]  }
  0x7c   :  { %v1817_v33 = vld [vmem:[#allocation8 + $0xe4] ss:$16 sps:$4 sm:$0xff]   ;;  %v1822_v34 = vld [vmem:[#allocation8 + $0xe0] ss:$16 sps:$4 sm:$0xff]   ;;  %v1795_v60 = vld [vmem:[#allocation8 + $0x68] ss:$16 sps:$4 sm:$0xff]  }
  0x7d   :  { %v1823_v35 = vld [vmem:[#allocation8 + $0x104] ss:$16 sps:$4 sm:$0xff]   ;;  %v1828_v36 = vld [vmem:[#allocation8 + $0x100] ss:$16 sps:$4 sm:$0xff]   ;;  %v1803_v61 = vld [vmem:[#allocation8 + $0x8c] ss:$16 sps:$4 sm:$0xff]  }
  0x7e   :  { %1726 = vmatpush3.bf16.msra.mxu0 %v1766_v9  ;;  %721 = vmatpush1.bf16.msra.mxu1 %v1792_v22  ;;  %v1829_v37 = vld [vmem:[#allocation8 + $0x124] ss:$16 sps:$4 sm:$0xff]   ;;  %v1834_v38 = vld [vmem:[#allocation8 + $0x120] ss:$16 sps:$4 sm:$0xff]   ;;  %v1801_v62 = vld [vmem:[#allocation8 + $0x88] ss:$16 sps:$4 sm:$0xff]  }
  0x7f   :  { %1727 = vmatprep.subr.bf16.mxu0 %v1767_v10  ;;  %722 = vmatprep.subr.bf16.mxu1 %v1793_v23  ;;  %v1835_v39 = vld [vmem:[#allocation8 + $0x144] ss:$16 sps:$4 sm:$0xff]   ;;  %v1840_v40 = vld [vmem:[#allocation8 + $0x140] ss:$16 sps:$4 sm:$0xff]   ;;  %v1809_v63 = vld [vmem:[#allocation8 + $0xac] ss:$16 sps:$4 sm:$0xff]  }
  0x80   :  { %v1841_v41 = vld [vmem:[#allocation8 + $0x164] ss:$16 sps:$4 sm:$0xff]   ;;  %v1846_v42 = vld [vmem:[#allocation8 + $0x160] ss:$16 sps:$4 sm:$0xff]   ;;  %v1807_v1 = vld [vmem:[#allocation8 + $0xa8] ss:$16 sps:$4 sm:$0xff]  }
  0x81   :  { %v1847_v43 = vld [vmem:[#allocation8 + $0x184] ss:$16 sps:$4 sm:$0xff]   ;;  %v1852_v44 = vld [vmem:[#allocation8 + $0x180] ss:$16 sps:$4 sm:$0xff]   ;;  %v1815_v2 = vld [vmem:[#allocation8 + $0xcc] ss:$16 sps:$4 sm:$0xff]  }
  0x82   :  { %1728 = vmatpush3.bf16.msra.mxu0 %v1768_v11  ;;  %723 = vmatpush1.bf16.msra.mxu1 %v1798_v25  ;;  %v1853_v45 = vld [vmem:[#allocation8 + $0x1a4] ss:$16 sps:$4 sm:$0xff]   ;;  %v1858_v46 = vld [vmem:[#allocation8 + $0x1a0] ss:$16 sps:$4 sm:$0xff]   ;;  %v1813_v3 = vld [vmem:[#allocation8 + $0xc8] ss:$16 sps:$4 sm:$0xff]  }
  0x83   :  { %1729 = vmatprep.subr.bf16.mxu0 %v1769_v12  ;;  %724 = vmatprep.subr.bf16.mxu1 %v1799_v27  ;;  %v1859_v47 = vld [vmem:[#allocation8 + $0x1c4] ss:$16 sps:$4 sm:$0xff]   ;;  %v1864_v48 = vld [vmem:[#allocation8 + $0x1c0] ss:$16 sps:$4 sm:$0xff]   ;;  %v1821_v4 = vld [vmem:[#allocation8 + $0xec] ss:$16 sps:$4 sm:$0xff]  }
  0x84   :  { %v1819_v5 = vld [vmem:[#allocation8 + $0xe8] ss:$16 sps:$4 sm:$0xff]   ;;  %v1827_v6 = vld [vmem:[#allocation8 + $0x10c] ss:$16 sps:$4 sm:$0xff]   ;;  %v1870_v23 = vld [vmem:[#allocation8 + $0x1e0] ss:$16 sps:$4 sm:$0xff]  }
  0x85   :  { %v1825_v7 = vld [vmem:[#allocation8 + $0x108] ss:$16 sps:$4 sm:$0xff]   ;;  %v1833_v8 = vld [vmem:[#allocation8 + $0x12c] ss:$16 sps:$4 sm:$0xff]  }
  0x86   :  { %1730 = vmatpush3.bf16.msra.mxu0 %v1770_v16  ;;  %725 = vmatpush1.bf16.msra.mxu1 %v1804_v28  ;;  %v1831_v9 = vld [vmem:[#allocation8 + $0x128] ss:$16 sps:$4 sm:$0xff]   ;;  %v1839_v10 = vld [vmem:[#allocation8 + $0x14c] ss:$16 sps:$4 sm:$0xff]  }
  0x87   :  { %1731 = vmatprep.subr.bf16.mxu0 %v1771_v17  ;;  %726 = vmatprep.subr.bf16.mxu1 %v1805_v29  ;;  %v1837_v11 = vld [vmem:[#allocation8 + $0x148] ss:$16 sps:$4 sm:$0xff]   ;;  %v1845_v12 = vld [vmem:[#allocation8 + $0x16c] ss:$16 sps:$4 sm:$0xff]  }
  0x88   :  { %v1843_v13 = vld [vmem:[#allocation8 + $0x168] ss:$16 sps:$4 sm:$0xff]   ;;  %v1851_v14 = vld [vmem:[#allocation8 + $0x18c] ss:$16 sps:$4 sm:$0xff]  }
  0x89   :  { %v1849_v15 = vld [vmem:[#allocation8 + $0x188] ss:$16 sps:$4 sm:$0xff]   ;;  %v1857_v16 = vld [vmem:[#allocation8 + $0x1ac] ss:$16 sps:$4 sm:$0xff]  }
  0x8a   :  { %1732 = vmatpush3.bf16.msra.mxu0 %v1772_v20  ;;  %727 = vmatpush1.bf16.msra.mxu1 %v1810_v30  ;;  %v1855_v17 = vld [vmem:[#allocation8 + $0x1a8] ss:$16 sps:$4 sm:$0xff]   ;;  %v1863_v18 = vld [vmem:[#allocation8 + $0x1cc] ss:$16 sps:$4 sm:$0xff]   ;;  %v1865_v20 = vld [vmem:[#allocation8 + $0x1e4] ss:$16 sps:$4 sm:$0xff]  }
  0x8b   :  { %1733 = vmatprep.subr.bf16.mxu0 %v1773_v21  ;;  %728 = vmatprep.subr.bf16.mxu1 %v1811_v31  ;;  %v1861_v19 = vld [vmem:[#allocation8 + $0x1c8] ss:$16 sps:$4 sm:$0xff]   ;;  %v1869_v21 = vld [vmem:[#allocation8 + $0x1ec] ss:$16 sps:$4 sm:$0xff]  }
  0x8c   :  { %v1867_v22 = vld [vmem:[#allocation8 + $0x1e8] ss:$16 sps:$4 sm:$0xff]   ;;  %v1876_v27 = vld [vmem:[#allocation10 + $0xc] ss:$16 sps:$4 sm:$0xff]  }
  0x8e   :  { %1734 = vmatpush3.bf16.msra.mxu0 %v1774_v24  ;;  %729 = vmatpush1.bf16.msra.mxu1 %v1816_v32  ;;  %v306_v24 = vld [vmem:[#allocation5] sm:$0xff] }
  0x8f   :  { %757 = vmatprep.subr.bf16.mxu0 %v1779_v26  ;;  %730 = vmatprep.subr.bf16.mxu1 %v1817_v33  ;;  %v309_v25 = vpack.c.bf16 %v306_v24, %v306_v24  ;;  %v1873_v26 = vld [vmem:[#allocation10 + $0x4] ss:$16 sps:$4 sm:$0xff]   ;;  %v1871_v33 = vld [vmem:[#allocation10] ss:$16 sps:$4 sm:$0xff]   ;;  %v1952_v24 = vld [vmem:[#allocation10 + $0x1a8] ss:$16 sps:$4 sm:$0xff]  }
  0x91   :  { %748 = vmatprep.mubr.bf16.mxu1 %v309_v25 }
  0x92   :  { %731 = vmatpush1.bf16.msra.mxu1 %v1822_v34  ;;  %v1874_v34 = vld [vmem:[#allocation10 + $0x8] ss:$16 sps:$4 sm:$0xff]  }
  0x93   :  { %732 = vmatprep.subr.bf16.mxu1 %v1823_v35 }
  0x96   :  { %733 = vmatpush1.bf16.msra.mxu1 %v1828_v36  ;;  %v1879_v36 = vld [vmem:[#allocation10 + $0x24] ss:$16 sps:$4 sm:$0xff]  }
  0x97   :  { %734 = vmatprep.subr.bf16.mxu1 %v1829_v37  ;;  %v1882_v37 = vld [vmem:[#allocation10 + $0x2c] ss:$16 sps:$4 sm:$0xff]  }
  0x9a   :  { %735 = vmatpush1.bf16.msra.mxu1 %v1834_v38  ;;  %v1877_v38 = vld [vmem:[#allocation10 + $0x20] ss:$16 sps:$4 sm:$0xff]  }
  0x9b   :  { %736 = vmatprep.subr.bf16.mxu1 %v1835_v39  ;;  %v1880_v39 = vld [vmem:[#allocation10 + $0x28] ss:$16 sps:$4 sm:$0xff]  }
  0x9e   :  { %737 = vmatpush1.bf16.msra.mxu1 %v1840_v40  ;;  %v1885_v40 = vld [vmem:[#allocation10 + $0x44] ss:$16 sps:$4 sm:$0xff]  }
  0x9f   :  { %738 = vmatprep.subr.bf16.mxu1 %v1841_v41  ;;  %v1888_v41 = vld [vmem:[#allocation10 + $0x4c] ss:$16 sps:$4 sm:$0xff]  }
  0xa2   :  { %739 = vmatpush1.bf16.msra.mxu1 %v1846_v42  ;;  %v1883_v42 = vld [vmem:[#allocation10 + $0x40] ss:$16 sps:$4 sm:$0xff]  }
  0xa3   :  { %740 = vmatprep.subr.bf16.mxu1 %v1847_v43  ;;  %v1886_v43 = vld [vmem:[#allocation10 + $0x48] ss:$16 sps:$4 sm:$0xff]  }
  0xa6   :  { %741 = vmatpush1.bf16.msra.mxu1 %v1852_v44  ;;  %v1891_v44 = vld [vmem:[#allocation10 + $0x64] ss:$16 sps:$4 sm:$0xff]  }
  0xa7   :  { %742 = vmatprep.subr.bf16.mxu1 %v1853_v45  ;;  %v1894_v45 = vld [vmem:[#allocation10 + $0x6c] ss:$16 sps:$4 sm:$0xff]  }
  0xaa   :  { %743 = vmatpush1.bf16.msra.mxu1 %v1858_v46  ;;  %v1889_v46 = vld [vmem:[#allocation10 + $0x60] ss:$16 sps:$4 sm:$0xff]  }
  0xab   :  { %744 = vmatprep.subr.bf16.mxu1 %v1859_v47  ;;  %v1892_v47 = vld [vmem:[#allocation10 + $0x68] ss:$16 sps:$4 sm:$0xff]  }
  0xae   :  { %745 = vmatpush1.bf16.msra.mxu1 %v1864_v48  ;;  %v1897_v48 = vld [vmem:[#allocation10 + $0x84] ss:$16 sps:$4 sm:$0xff]  }
  0xaf   :  { %746 = vmatprep.subr.bf16.mxu1 %v1865_v20  ;;  %v1943_v20 = vld [vmem:[#allocation10 + $0x180] ss:$16 sps:$4 sm:$0xff]  }
  0xb2   :  { %747 = vmatpush1.bf16.msra.mxu1 %v1870_v23  ;;  %v1949_v23 = vld [vmem:[#allocation10 + $0x1a0] ss:$16 sps:$4 sm:$0xff]  }
  0xb3   :  { %1236 = vmatprep.subr.bf16.mxu1 %v1873_v26  ;;  %v1957_v26 = vld [vmem:[#allocation10 + $0x1c4] ss:$16 sps:$4 sm:$0xff]  }
  0xf0   :  { %v129_v52 = vpop.permute.xlu0 %128 }
  0xf1   :  { %vm130_vm0 = vcmp.eq.s32.totalorder %v129_v52, %v125_v50  ;;  %vm131_vm1 = vcmp.eq.s32.totalorder %v129_v52, %v126_v51  ;;  %v1900_v50 = vld [vmem:[#allocation10 + $0x8c] ss:$16 sps:$4 sm:$0xff]   ;;  %v1895_v51 = vld [vmem:[#allocation10 + $0x80] ss:$16 sps:$4 sm:$0xff]   ;;  %v1898_v52 = vld [vmem:[#allocation10 + $0x88] ss:$16 sps:$4 sm:$0xff]  }
  0xf2   :  { %vm1567_vm2 = vmpackc.low %vm130_vm0, %vm130_vm0 }
  0xf3   :  { %vm1565_vm3 = vmpackc.low %vm131_vm1, %vm131_vm1 }
  0xf4   :  { %1566 = vmatprep.mubr.msk.bf16.mxu0 %vm1565_vm3, %v2246_v55 }
  0xf5   :  { %1568 = vmatmul.mubr.msk.bf16.vlgmr.msra.gmra.mrb[0].mxu0 %vm1567_vm2, %v2246_v55  ;;  %v1901_v55 = vld [vmem:[#allocation10 + $0xa0] ss:$16 sps:$4 sm:$0xff]  }
  0xf6   :  { %758 = vmatpush1.bf16.msra.mxu0 %v1777_v53  ;;  %789 = vmatprep.mubr.bf16.mxu0 %v309_v25  ;;  %v1903_v53 = vld [vmem:[#allocation10 + $0xa4] ss:$16 sps:$4 sm:$0xff]   ;;  %v1954_v25 = vld [vmem:[#allocation10 + $0x1ac] ss:$16 sps:$4 sm:$0xff]  }
  0xf7   :  { %759 = vmatprep.subr.bf16.mxu0 %v1785_v54  ;;  %v1906_v54 = vld [vmem:[#allocation10 + $0xac] ss:$16 sps:$4 sm:$0xff]  }
  0xfa   :  { %760 = vmatpush1.bf16.msra.mxu0 %v1783_v56  ;;  %v1904_v56 = vld [vmem:[#allocation10 + $0xa8] ss:$16 sps:$4 sm:$0xff]  }
  0xfb   :  { %761 = vmatprep.subr.bf16.mxu0 %v1791_v57  ;;  %v1909_v57 = vld [vmem:[#allocation10 + $0xc4] ss:$16 sps:$4 sm:$0xff]  }
  0xfe   :  { %762 = vmatpush1.bf16.msra.mxu0 %v1789_v58  ;;  %v1912_v58 = vld [vmem:[#allocation10 + $0xcc] ss:$16 sps:$4 sm:$0xff]  }
  0xff   :  { %763 = vmatprep.subr.bf16.mxu0 %v1797_v59  ;;  %v1907_v59 = vld [vmem:[#allocation10 + $0xc0] ss:$16 sps:$4 sm:$0xff]  }
 0x102   :  { %764 = vmatpush1.bf16.msra.mxu0 %v1795_v60  ;;  %v1910_v60 = vld [vmem:[#allocation10 + $0xc8] ss:$16 sps:$4 sm:$0xff]  }
 0x103   :  { %765 = vmatprep.subr.bf16.mxu0 %v1803_v61  ;;  %v1915_v61 = vld [vmem:[#allocation10 + $0xe4] ss:$16 sps:$4 sm:$0xff]  }
 0x106   :  { %766 = vmatpush1.bf16.msra.mxu0 %v1801_v62  ;;  %v1918_v62 = vld [vmem:[#allocation10 + $0xec] ss:$16 sps:$4 sm:$0xff]  }
 0x107   :  { %767 = vmatprep.subr.bf16.mxu0 %v1809_v63  ;;  %v1913_v63 = vld [vmem:[#allocation10 + $0xe0] ss:$16 sps:$4 sm:$0xff]  }
 0x10a   :  { %768 = vmatpush1.bf16.msra.mxu0 %v1807_v1  ;;  %v1916_v1 = vld [vmem:[#allocation10 + $0xe8] ss:$16 sps:$4 sm:$0xff]  }
 0x10b   :  { %769 = vmatprep.subr.bf16.mxu0 %v1815_v2  ;;  %v1921_v2 = vld [vmem:[#allocation10 + $0x104] ss:$16 sps:$4 sm:$0xff]  }
 0x10e   :  { %770 = vmatpush1.bf16.msra.mxu0 %v1813_v3  ;;  %v1924_v3 = vld [vmem:[#allocation10 + $0x10c] ss:$16 sps:$4 sm:$0xff]  }
 0x10f   :  { %771 = vmatprep.subr.bf16.mxu0 %v1821_v4  ;;  %v1919_v4 = vld [vmem:[#allocation10 + $0x100] ss:$16 sps:$4 sm:$0xff]  }
 0x112   :  { %772 = vmatpush1.bf16.msra.mxu0 %v1819_v5  ;;  %v1922_v5 = vld [vmem:[#allocation10 + $0x108] ss:$16 sps:$4 sm:$0xff]  }
 0x113   :  { %773 = vmatprep.subr.bf16.mxu0 %v1827_v6  ;;  %v1927_v6 = vld [vmem:[#allocation10 + $0x124] ss:$16 sps:$4 sm:$0xff]  }
 0x116   :  { %774 = vmatpush1.bf16.msra.mxu0 %v1825_v7  ;;  %v1930_v7 = vld [vmem:[#allocation10 + $0x12c] ss:$16 sps:$4 sm:$0xff]  }
 0x117   :  { %775 = vmatprep.subr.bf16.mxu0 %v1833_v8  ;;  %v1925_v8 = vld [vmem:[#allocation10 + $0x120] ss:$16 sps:$4 sm:$0xff]  }
 0x11a   :  { %776 = vmatpush1.bf16.msra.mxu0 %v1831_v9  ;;  %v1928_v9 = vld [vmem:[#allocation10 + $0x128] ss:$16 sps:$4 sm:$0xff]  }
 0x11b   :  { %777 = vmatprep.subr.bf16.mxu0 %v1839_v10  ;;  %v1933_v10 = vld [vmem:[#allocation10 + $0x144] ss:$16 sps:$4 sm:$0xff]  }
 0x11e   :  { %778 = vmatpush1.bf16.msra.mxu0 %v1837_v11  ;;  %v1936_v11 = vld [vmem:[#allocation10 + $0x14c] ss:$16 sps:$4 sm:$0xff]  }
 0x11f   :  { %779 = vmatprep.subr.bf16.mxu0 %v1845_v12  ;;  %v1931_v12 = vld [vmem:[#allocation10 + $0x140] ss:$16 sps:$4 sm:$0xff]  }
 0x122   :  { %780 = vmatpush1.bf16.msra.mxu0 %v1843_v13  ;;  %v1934_v13 = vld [vmem:[#allocation10 + $0x148] ss:$16 sps:$4 sm:$0xff]  }
 0x123   :  { %781 = vmatprep.subr.bf16.mxu0 %v1851_v14  ;;  %v1939_v14 = vld [vmem:[#allocation10 + $0x164] ss:$16 sps:$4 sm:$0xff]  }
 0x126   :  { %782 = vmatpush1.bf16.msra.mxu0 %v1849_v15  ;;  %v1942_v15 = vld [vmem:[#allocation10 + $0x16c] ss:$16 sps:$4 sm:$0xff]  }
 0x127   :  { %783 = vmatprep.subr.bf16.mxu0 %v1857_v16  ;;  %v1937_v16 = vld [vmem:[#allocation10 + $0x160] ss:$16 sps:$4 sm:$0xff]  }
 0x12a   :  { %784 = vmatpush1.bf16.msra.mxu0 %v1855_v17  ;;  %v1940_v17 = vld [vmem:[#allocation10 + $0x168] ss:$16 sps:$4 sm:$0xff]  }
 0x12b   :  { %785 = vmatprep.subr.bf16.mxu0 %v1863_v18  ;;  %v1945_v18 = vld [vmem:[#allocation10 + $0x184] ss:$16 sps:$4 sm:$0xff]  }
 0x12e   :  { %786 = vmatpush1.bf16.msra.mxu0 %v1861_v19  ;;  %v1948_v19 = vld [vmem:[#allocation10 + $0x18c] ss:$16 sps:$4 sm:$0xff]  }
 0x12f   :  { %787 = vmatprep.subr.bf16.mxu0 %v1869_v21  ;;  %v1946_v21 = vld [vmem:[#allocation10 + $0x188] ss:$16 sps:$4 sm:$0xff]  }
 0x132   :  { %788 = vmatpush1.bf16.msra.mxu0 %v1867_v22  ;;  %v1951_v22 = vld [vmem:[#allocation10 + $0x1a4] ss:$16 sps:$4 sm:$0xff]  }
 0x133   :  { %1277 = vmatprep.subr.bf16.mxu0 %v1876_v27  ;;  %v1960_v27 = vld [vmem:[#allocation10 + $0x1cc] ss:$16 sps:$4 sm:$0xff]  }
 0x1c8   :  { %v1735_v28 = vpop.f32.mrb[0].mxu0 }
 0x1c9   :  { %v1736_v29 = vpop.f32.mrb[1].mxu0 }
 0x1ca   :  { %v1737_v30 = vadd.f32 %v1736_v29, %v1735_v28  ;;  %v1738_v31 = vpop.f32.mrb[2].mxu0  ;;  %v825_v28 = vld [vmem:[#allocation5 + $0x8] sm:$0xff]  ;;  %v1955_v29 = vld [vmem:[#allocation10 + $0x1c0] ss:$16 sps:$4 sm:$0xff]  }
 0x1cb   :  { %v1739_v32 = vpop.f32.mrb[3].mxu0  ;;  %v829_v31 = vpack.c.bf16 %v825_v28, %v825_v28  ;;  %v1990_v28 = vld [vmem:[#allocation11 + $0x74] ss:$8 sps:$4 sm:$0xff]  }
 0x1cc   :  { %v308_v35 = vpack.c.bf16 %v1737_v30, %v1737_v30  ;;  %v1958_v30 = vld [vmem:[#allocation10 + $0x1c8] ss:$16 sps:$4 sm:$0xff]   ;;  %v1963_v32 = vld [vmem:[#allocation10 + $0x1e4] ss:$16 sps:$4 sm:$0xff]  }
 0x1ce   :  { %749 = vmatmul.mubr.bf16.vlgmr.msra.gmra.mrb[0].mxu1 %v308_v35  ;;  %790 = vmatmul.mubr.bf16.vlgmr.msra.gmra.mrb[4].mxu0 %v308_v35  ;;  %v1964_v35 = vld [vmem:[#allocation10 + $0x1e8] ss:$16 sps:$4 sm:$0xff]  }
 0x1cf   :  { %1237 = vmatpush1.bf16.msra.mxu1 %v1871_v33  ;;  %1278 = vmatpush1.bf16.msra.mxu0 %v1874_v34  ;;  %v1966_v33 = vld [vmem:[#allocation10 + $0x1ec] ss:$16 sps:$4 sm:$0xff]   ;;  %v1961_v34 = vld [vmem:[#allocation10 + $0x1e0] ss:$16 sps:$4 sm:$0xff]  }
 0x1d0   :  { %1238 = vmatprep.subr.bf16.mxu1 %v1879_v36  ;;  %1279 = vmatprep.subr.bf16.mxu0 %v1882_v37  ;;  %v2408_v36 = vshrl.u32 %v124_v49, 7 }
 0x1d1   :  { %1268 = vmatprep.mubr.bf16.mxu1 %v829_v31  ;;  %1309 = vmatprep.mubr.bf16.mxu0 %v829_v31 }
 0x1d2   :  { %v2411_v37 = vsub.s32 0, %v2408_v36 }
 0x1d3   :  { %1239 = vmatpush1.bf16.msra.mxu1 %v1877_v38  ;;  %1280 = vmatpush1.bf16.msra.mxu0 %v1880_v39  ;;  %v374_v38 = vld [vmem:[%s2490_s6] sm:$0xf]  ;;  %v2417_v39 = vsub.s32 1, %v2408_v36 }
 0x1d4   :  { %1240 = vmatprep.subr.bf16.mxu1 %v1885_v40  ;;  %1281 = vmatprep.subr.bf16.mxu0 %v1888_v41  ;;  %v379_v40 = vrot.slane %v374_v38, %v2411_v37 }
 0x1d5   :  { %v383_v41 = vrot.slane %v374_v38, %v2417_v39 }
 0x1d7   :  { %1241 = vmatpush1.bf16.msra.mxu1 %v1883_v42  ;;  %1282 = vmatpush1.bf16.msra.mxu0 %v1886_v43 }
 0x1d8   :  { %1242 = vmatprep.subr.bf16.mxu1 %v1891_v44  ;;  %1283 = vmatprep.subr.bf16.mxu0 %v1894_v45  ;;  %v390_v44 = vsub.s32 3, %v2408_v36 }
 0x1db   :  { %1243 = vmatpush1.bf16.msra.mxu1 %v1889_v46  ;;  %1284 = vmatpush1.bf16.msra.mxu0 %v1892_v47 }
 0x1dc   :  { %1244 = vmatprep.subr.bf16.mxu1 %v1897_v48  ;;  %1285 = vmatprep.subr.bf16.mxu0 %v1900_v50 }
 0x1df   :  { %1245 = vmatpush1.bf16.msra.mxu1 %v1895_v51  ;;  %1286 = vmatpush1.bf16.msra.mxu0 %v1898_v52 }
 0x1e0   :  { %1246 = vmatprep.subr.bf16.mxu1 %v1903_v53  ;;  %1287 = vmatprep.subr.bf16.mxu0 %v1906_v54 }
 0x1e3   :  { %1247 = vmatpush1.bf16.msra.mxu1 %v1901_v55  ;;  %1288 = vmatpush1.bf16.msra.mxu0 %v1904_v56  ;;  %v391_v55 = vrot.slane %v374_v38, %v390_v44  ;;  %v386_v56 = vsub.s32 2, %v2408_v36 }
 0x1e4   :  { %1248 = vmatprep.subr.bf16.mxu1 %v1909_v57  ;;  %1289 = vmatprep.subr.bf16.mxu0 %v1912_v58 }
 0x1e5   :  { %v387_v58 = vrot.slane %v374_v38, %v386_v56 }
 0x1e7   :  { %1249 = vmatpush1.bf16.msra.mxu1 %v1907_v59  ;;  %1290 = vmatpush1.bf16.msra.mxu0 %v1910_v60 }
 0x1e8   :  { %1250 = vmatprep.subr.bf16.mxu1 %v1915_v61  ;;  %1291 = vmatprep.subr.bf16.mxu0 %v1918_v62 }
 0x1eb   :  { %1251 = vmatpush1.bf16.msra.mxu1 %v1913_v63  ;;  %1292 = vmatpush1.bf16.msra.mxu0 %v1916_v1 }
 0x1ec   :  { %1252 = vmatprep.subr.bf16.mxu1 %v1921_v2  ;;  %1293 = vmatprep.subr.bf16.mxu0 %v1924_v3 }
 0x1ef   :  { %1253 = vmatpush1.bf16.msra.mxu1 %v1919_v4  ;;  %1294 = vmatpush1.bf16.msra.mxu0 %v1922_v5  ;;  %v307_v4 = vld [vmem:[#allocation7] sm:$0xff] }
 0x1f0   :  { %1254 = vmatprep.subr.bf16.mxu1 %v1927_v6  ;;  %1295 = vmatprep.subr.bf16.mxu0 %v1930_v7 }
 0x1f3   :  { %1255 = vmatpush1.bf16.msra.mxu1 %v1925_v8  ;;  %1296 = vmatpush1.bf16.msra.mxu0 %v1928_v9 }
 0x1f4   :  { %1256 = vmatprep.subr.bf16.mxu1 %v1933_v10  ;;  %1297 = vmatprep.subr.bf16.mxu0 %v1936_v11 }
 0x1f7   :  { %1257 = vmatpush1.bf16.msra.mxu1 %v1931_v12  ;;  %1298 = vmatpush1.bf16.msra.mxu0 %v1934_v13 }
 0x1f8   :  { %1258 = vmatprep.subr.bf16.mxu1 %v1939_v14  ;;  %1299 = vmatprep.subr.bf16.mxu0 %v1942_v15  ;;  %v1969_v15 = vld [vmem:[#allocation11 + $0x4] ss:$8 sps:$4 sm:$0xff]  }
 0x1fb   :  { %1259 = vmatpush1.bf16.msra.mxu1 %v1937_v16  ;;  %1300 = vmatpush1.bf16.msra.mxu0 %v1940_v17  ;;  %v1967_v16 = vld [vmem:[#allocation11] ss:$8 sps:$4 sm:$0xff]   ;;  %v1972_v17 = vld [vmem:[#allocation11 + $0x14] ss:$8 sps:$4 sm:$0xff]  }
 0x1fc   :  { %1260 = vmatprep.subr.bf16.mxu1 %v1945_v18  ;;  %1301 = vmatprep.subr.bf16.mxu0 %v1948_v19  ;;  %v1970_v18 = vld [vmem:[#allocation11 + $0x10] ss:$8 sps:$4 sm:$0xff]   ;;  %v1975_v19 = vld [vmem:[#allocation11 + $0x24] ss:$8 sps:$4 sm:$0xff]  }
 0x1ff   :  { %1261 = vmatpush1.bf16.msra.mxu1 %v1943_v20  ;;  %1302 = vmatpush1.bf16.msra.mxu0 %v1946_v21  ;;  %v1973_v20 = vld [vmem:[#allocation11 + $0x20] ss:$8 sps:$4 sm:$0xff]   ;;  %v1978_v21 = vld [vmem:[#allocation11 + $0x34] ss:$8 sps:$4 sm:$0xff]  }
 0x200   :  { %1262 = vmatprep.subr.bf16.mxu1 %v1951_v22  ;;  %1303 = vmatprep.subr.bf16.mxu0 %v1954_v25  ;;  %v1976_v22 = vld [vmem:[#allocation11 + $0x30] ss:$8 sps:$4 sm:$0xff]  }
 0x201   :  { %v1982_v25 = vld [vmem:[#allocation11 + $0x50] ss:$8 sps:$4 sm:$0xff]  }
 0x203   :  { %1263 = vmatpush1.bf16.msra.mxu1 %v1949_v23  ;;  %1304 = vmatpush1.bf16.msra.mxu0 %v1952_v24  ;;  %v1981_v23 = vld [vmem:[#allocation11 + $0x44] ss:$8 sps:$4 sm:$0xff]   ;;  %v1979_v24 = vld [vmem:[#allocation11 + $0x40] ss:$8 sps:$4 sm:$0xff]  }
 0x204   :  { %1264 = vmatprep.subr.bf16.mxu1 %v1957_v26  ;;  %1305 = vmatprep.subr.bf16.mxu0 %v1960_v27  ;;  %v1987_v26 = vld [vmem:[#allocation11 + $0x64] ss:$8 sps:$4 sm:$0xff]   ;;  %v1985_v27 = vld [vmem:[#allocation11 + $0x60] ss:$8 sps:$4 sm:$0xff]  }
 0x207   :  { %1265 = vmatpush1.bf16.msra.mxu1 %v1955_v29  ;;  %1306 = vmatpush1.bf16.msra.mxu0 %v1958_v30  ;;  %v1988_v29 = vld [vmem:[#allocation11 + $0x70] ss:$8 sps:$4 sm:$0xff]   ;;  %v894_v30 = vld [vmem:[%s2491_s7] sm:$0xf]  ;;  %s2247_s7 = smov [#allocation14]  }
 0x208   :  { %1266 = vmatprep.subr.bf16.mxu1 %v1963_v32  ;;  %1307 = vmatprep.subr.bf16.mxu0 %v1966_v33  ;;  %v899_v31 = vrot.slane %v894_v30, %v2411_v37  ;;  %v903_v32 = vrot.slane %v894_v30, %v2417_v39  ;;  %s1513_s30 = sshll.u32 %s2247_s7, 4  ;;  %s1514_s30 = int_to_ptr.vmem [resolvable:$true] %s1513_s30 }
 0x209   :  { %s2155_s17 = scalar_lea.vmem %s1514_s30, 256  ;;  %p2160_p7 = scmp.lt.s32.totalorder %s1514_s30, %s1514_s30 }
 0x20a   :  { %p2156_p6 = scmp.ne.s32.totalorder %s1514_s30, %s2155_s17  ;;  %p2161_p8 = scmp.lt.s32.totalorder %s2155_s17, %s2155_s17 }
 0x20b   :  { %1267 = vmatpush1.bf16.msra.mxu1 %v1961_v34  ;;  %1308 = vmatpush1.bf16.msra.mxu0 %v1964_v35 }
 0x20c   :  { %1455 = vmatprep.subr.bf16.mxu1 %v1969_v15  ;;  %p2162_p9 = por %p2161_p8, %p2160_p7 }
 0x20e   :  { %p2163_p10 = pnand %p2162_p9, %p2156_p6 }
 0x2a1   :  { %v750_v42 = vpop.f32.mrb[0].mxu1  ;;  %v791_v43 = vpop.f32.mrb[4].mxu0 }
 0x2a2   :  { %v751_v49 = vadd.f32 %v750_v42, %v379_v40  ;;  %v752_v45 = vpop.f32.mrb[1].mxu1  ;;  %v793_v46 = vpop.f32.mrb[5].mxu0  ;;  %v792_v60 = vadd.f32 %v791_v43, %v387_v58 }
 0x2a3   :  { %v753_v47 = vadd.f32 %v752_v45, %v383_v41  ;;  %v754_v48 = vpop.f32.mrb[2].mxu1  ;;  %v795_v50 = vpop.f32.mrb[6].mxu0  ;;  %v794_v57 = vadd.f32 %v793_v46, %v391_v55 }
 0x2a4   :  { %v1633_v51 = vmul.f32 -1.442695, %v751_v49  ;;  %v755_v52 = vpop.f32.mrb[3].mxu1  ;;  %v796_v53 = vpop.f32.mrb[7].mxu0  ;;  %v911_v48 = vrot.slane %v894_v30, %v390_v44 }
 0x2a5   :  { %v1634_v54 = vmul.f32 -1.442695, %v753_v47  ;;  %v1635_v59 = vmul.f32 -1.442695, %v794_v57 }
 0x2a6   :  { %1991 = vpow2.f32 %v1633_v51  ;;  %v907_v51 = vrot.slane %v894_v30, %v386_v56 }
 0x2a7   :  { %1993 = vpow2.f32 %v1634_v54 }
 0x2a8   :  { %1995 = vpow2.f32 %v1635_v59 }
 0x2a9   :  { %1997 = vtanh.f32 %v792_v60 }
 0x2b0   :  { %v1992_v61 = vpop.eup %1991 }
 0x2b1   :  { %v1994_v62 = vpop.eup %1993  ;;  %v801_v63 = vadd.f32 1.0, %v1992_v61  ;;  %v827_v61 = vld [vmem:[#allocation7 + $0x8] sm:$0xff] }
 0x2b2   :  { %v807_v1 = vadd.f32 1.0, %v1994_v62  ;;  %v1996_v2 = vpop.eup %1995 }
 0x2b3   :  { %1999 = vrcp.f32 %v801_v63  ;;  %v1998_v3 = vpop.eup %1997  ;;  %v814_v8 = vadd.f32 1.0, %v1996_v2 }
 0x2b4   :  { %2001 = vrcp.f32 %v807_v1 }
 0x2b5   :  { %2003 = vrcp.f32 %v814_v8 }
 0x2bd   :  { %v2000_v5 = vpop.eup %1999 }
 0x2be   :  { %v2002_v6 = vpop.eup %2001  ;;  %v818_v7 = vmul.f32 %v2000_v5, %v1998_v3 }
 0x2bf   :  { %v817_v9 = vmul.f32 %v2002_v6, %v307_v4  ;;  %v2004_v11 = vpop.eup %2003 }
 0x2c1   :  { %v819_v10 = vadd.f32 %v818_v7, %v817_v9 }
 0x2c3   :  { %2005 = vtanh.f32 %v819_v10  ;;  %823 = vst [vmem:[#allocation16] sm:$0xff] %v819_v10 }
 0x2cd   :  { %v2006_v12 = vpop.eup %2005 }
 0x2ce   :  { %v821_v13 = vmul.f32 %v2006_v12, %v2004_v11 }
 0x2d0   :  { %v828_v14 = vpack.c.bf16 %v821_v13, %v821_v13  ;;  %822 = vst [vmem:[#allocation14] sm:$0xff] %v821_v13 }
 0x2d2   :  { %1269 = vmatmul.mubr.bf16.vlgmr.msra.gmra.mrb[4].mxu1 %v828_v14  ;;  %1310 = vmatmul.mubr.bf16.vlgmr.msra.gmra.mrb[8].mxu0 %v828_v14 }
 0x2d3   :  { %1487 = vmatprep.mubr.bf16.mxu1 %v2245_v0  ;;  %1456 = vmatpush1.bf16.msra.mxu1 %v1967_v16  ;;  %v1984_v0 = vld [vmem:[#allocation11 + $0x54] ss:$8 sps:$4 sm:$0xff]  }
 0x2d4   :  { %1457 = vmatprep.subr.bf16.mxu1 %v1972_v17 }
 0x2d7   :  { %1458 = vmatpush1.bf16.msra.mxu1 %v1970_v18 }
 0x2d8   :  { %1459 = vmatprep.subr.bf16.mxu1 %v1975_v19 }
 0x2db   :  { %1460 = vmatpush1.bf16.msra.mxu1 %v1973_v20 }
 0x2dc   :  { %1461 = vmatprep.subr.bf16.mxu1 %v1978_v21 }
 0x2df   :  { %1462 = vmatpush1.bf16.msra.mxu1 %v1976_v22 }
 0x2e0   :  { %1463 = vmatprep.subr.bf16.mxu1 %v1981_v23 }
 0x2e3   :  { %1464 = vmatpush1.bf16.msra.mxu1 %v1979_v24 }
 0x2e4   :  { %1465 = vmatprep.subr.bf16.mxu1 %v1984_v0 }
 0x2e7   :  { %1466 = vmatpush1.bf16.msra.mxu1 %v1982_v25 }
 0x2e8   :  { %1467 = vmatprep.subr.bf16.mxu1 %v1987_v26 }
 0x2eb   :  { %1468 = vmatpush1.bf16.msra.mxu1 %v1985_v27 }
 0x2ec   :  { %1469 = vmatprep.subr.bf16.mxu1 %v1990_v28 }
 0x2ef   :  { %1470 = vmatpush1.bf16.msra.mxu1 %v1988_v29 }
 0x3a5   :  { %v1270_v33 = vpop.f32.mrb[4].mxu1  ;;  %v1311_v34 = vpop.f32.mrb[8].mxu0 }
 0x3a6   :  { %v1271_v35 = vadd.f32 %v1270_v33, %v899_v31  ;;  %v1272_v38 = vpop.f32.mrb[5].mxu1  ;;  %v1313_v40 = vpop.f32.mrb[9].mxu0  ;;  %v1312_v53 = vadd.f32 %v1311_v34, %v907_v51 }
 0x3a7   :  { %v1273_v41 = vadd.f32 %v1272_v38, %v903_v32  ;;  %v1274_v42 = vpop.f32.mrb[6].mxu1  ;;  %v1315_v43 = vpop.f32.mrb[10].mxu0  ;;  %v1314_v50 = vadd.f32 %v1313_v40, %v911_v48 }
 0x3a8   :  { %v1700_v49 = vmul.f32 -1.442695, %v1271_v35  ;;  %v1275_v45 = vpop.f32.mrb[7].mxu1  ;;  %v1316_v46 = vpop.f32.mrb[11].mxu0 }
 0x3a9   :  { %v1701_v47 = vmul.f32 -1.442695, %v1273_v41  ;;  %v1702_v52 = vmul.f32 -1.442695, %v1314_v50 }
 0x3aa   :  { %2007 = vpow2.f32 %v1700_v49 }
 0x3ab   :  { %2009 = vpow2.f32 %v1701_v47 }
 0x3ac   :  { %2011 = vpow2.f32 %v1702_v52 }
 0x3ad   :  { %2013 = vtanh.f32 %v1312_v53 }
 0x3b4   :  { %v2008_v54 = vpop.eup %2007 }
 0x3b5   :  { %v2010_v55 = vpop.eup %2009  ;;  %v1321_v57 = vadd.f32 1.0, %v2008_v54 }
 0x3b6   :  { %v1327_v58 = vadd.f32 1.0, %v2010_v55  ;;  %v2012_v59 = vpop.eup %2011 }
 0x3b7   :  { %2015 = vrcp.f32 %v1321_v57  ;;  %v2014_v60 = vpop.eup %2013  ;;  %v1334_v1 = vadd.f32 1.0, %v2012_v59 }
 0x3b8   :  { %2017 = vrcp.f32 %v1327_v58 }
 0x3b9   :  { %2019 = vrcp.f32 %v1334_v1 }
 0x3c1   :  { %v2016_v44 = vpop.eup %2015 }
 0x3c2   :  { %v2018_v62 = vpop.eup %2017  ;;  %v1338_v63 = vmul.f32 %v2016_v44, %v2014_v60 }
 0x3c3   :  { %v1337_v2 = vmul.f32 %v2018_v62, %v827_v61  ;;  %v2020_v56 = vpop.eup %2019 }
 0x3c5   :  { %v1339_v36 = vadd.f32 %v1338_v63, %v1337_v2 }
 0x3c7   :  { %2021 = vtanh.f32 %v1339_v36  ;;  %1345 = vst [vmem:[#allocation16 + $0x8] sm:$0xff] %v1339_v36 }
 0x3d1   :  { %v2022_v3 = vpop.eup %2021 }
 0x3d2   :  { %v1341_v4 = vmul.f32 %v2022_v3, %v2020_v56 }
 0x3d4   :  { %v1346_v5 = vpack.c.bf16 %v1341_v4, %v1341_v4  ;;  %1343 = vst [vmem:[#allocation14 + $0x8] sm:$0xff] %v1341_v4 }
 0x3d6   :  { %1488 = vmatmul.mubr.bf16.vlgmr.msra.gmra.mrb[8].mxu1 %v1346_v5 }
 0x3d7   :  { %2166 = shalt.err (!%p2163_p10)
}
 0x3d8   :  { %s2167_s3 = scalar_lea.hbm %s2495_s11, 256 }
 0x3d9   :  { %p2168_p11 = scmp.ne.s32.totalorder %s2495_s11, %s2167_s3  ;;  %p2171_p12 = scmp.lt.u32.totalorder %s2167_s3, %s2495_s11 }
 0x3db   :  { %p2173_p13 = pnand %p2171_p12, %p2168_p11 }
 0x3dd   :  { %2176 = shalt.err (!%p2173_p13)
}
 0x3de   :  { %1519 = dma.vmem_to_hbm [thread:$0]  %s1514_s30, 256, %s2495_s11, [#allocation15], %s2234_s13, %s2234_s13, %s2235_s14  }
 0x3df   :  { %s2248_s15 = smov [#allocation16]  }
 0x3e0   :  { %s1525_s4 = sshll.u32 %s2248_s15, 4  ;;  %s1526_s4 = int_to_ptr.vmem [resolvable:$true] %s1525_s4 }
 0x3e1   :  { %s2177_s18 = scalar_lea.vmem %s1526_s4, 256  ;;  %p2182_p1 = scmp.lt.s32.totalorder %s1526_s4, %s1526_s4 }
 0x3e2   :  { %p2178_p0 = scmp.ne.s32.totalorder %s1526_s4, %s2177_s18  ;;  %p2183_p2 = scmp.lt.s32.totalorder %s2177_s18, %s2177_s18 }
 0x3e4   :  { %p2184_p3 = por %p2183_p2, %p2182_p1 }
 0x3e6   :  { %p2185_p4 = pnand %p2184_p3, %p2178_p0 }
 0x3e8   :  { %2188 = shalt.err (!%p2185_p4)
}
 0x3e9   :  { %s2189_s5 = scalar_lea.hbm %s2496_s12, 256 }
 0x3ea   :  { %p2190_p5 = scmp.ne.s32.totalorder %s2496_s12, %s2189_s5  ;;  %p2193_p6 = scmp.lt.u32.totalorder %s2189_s5, %s2496_s12 }
 0x3ec   :  { %p2195_p7 = pnand %p2193_p6, %p2190_p5 }
 0x3ee   :  { %2198 = shalt.err (!%p2195_p7)
}
 0x3ef   :  { %1531 = dma.vmem_to_hbm [thread:$0]  %s1526_s4, 256, %s2496_s12, [#allocation15], %s2234_s13, %s2234_s13, %s2235_s14  }
 0x3f0   :  { %v1363_v6 = vld [vmem:[%s2493_s9] sm:$0x3]  ;;  %s2249_s7 = smov [#allocation13]  }
 0x3f1   :  { %v1368_v7 = vrot.slane %v1363_v6, %v2411_v37  ;;  %v1372_v8 = vrot.slane %v1363_v6, %v2417_v39  ;;  %s1504_s30 = sshll.u32 %s2249_s7, 4  ;;  %s1505_s30 = int_to_ptr.vmem [resolvable:$true] %s1504_s30 }
 0x3f2   :  { %s2199_s12 = scalar_lea.vmem %s1505_s30, 256  ;;  %p2204_p9 = scmp.lt.s32.totalorder %s1505_s30, %s1505_s30 }
 0x3f3   :  { %p2200_p8 = scmp.ne.s32.totalorder %s1505_s30, %s2199_s12  ;;  %p2205_p10 = scmp.lt.s32.totalorder %s2199_s12, %s2199_s12 }
 0x3f5   :  { %p2206_p11 = por %p2205_p10, %p2204_p9 }
 0x3f7   :  { %p2207_p12 = pnand %p2206_p11, %p2200_p8 }
 0x4a9   :  { %v1489_v9 = vpop.f32.mrb[8].mxu1 }
 0x4aa   :  { %v1490_v10 = vadd.f32 %v1489_v9, %v1368_v7  ;;  %v1491_v11 = vpop.f32.mrb[9].mxu1 }
 0x4ab   :  { %v1492_v12 = vadd.f32 %v1491_v11, %v1372_v8  ;;  %v1493_v13 = vpop.f32.mrb[10].mxu1 }
 0x4ac   :  { %1496 = vst [vmem:[#allocation13] sm:$0xff] %v1490_v10  ;;  %v1494_v14 = vpop.f32.mrb[11].mxu1 }
 0x4ad   :  { %1497 = vst [vmem:[#allocation13 + $0x8] sm:$0xff] %v1492_v12 }
 0x4ae   :  { %2210 = shalt.err (!%p2207_p12)
}
 0x4af   :  { %s2211_s14 = scalar_lea.hbm %s2494_s10, 256 }
 0x4b0   :  { %p2212_p13 = scmp.ne.s32.totalorder %s2494_s10, %s2211_s14  ;;  %p2215_p0 = scmp.lt.u32.totalorder %s2211_s14, %s2494_s10 }
 0x4b2   :  { %p2217_p1 = pnand %p2215_p0, %p2212_p13 }
 0x4b4   :  { %2220 = shalt.err (!%p2217_p1)
}
 0x4b5   :  { %1507 = dma.vmem_to_hbm [thread:$0]  %s1505_s30, 256, %s2494_s10, [#allocation4]  }
 0x4b6   :  { %2229 = dma.done.wait [#allocation4], 256  }
 0x4b7   :  { %2230 = vsyncadd [#allocation4], 4294967040 }
 0x4b8   :  { %2231 = dma.done.wait [#allocation15], 512  }
 0x4b9   :  { %2232 = vsyncadd [#allocation15], 4294966784 }
 0x4ba   :  { %1541 = vsyncpa [#allocation3], 1 }
 0x4bb   :  { %1542 = vsyncpa [#allocation6], 1 }
 0x4bc   :  { %1543 = vsyncpa [#allocation9], 1 }
 0x4bd   :  { %1544 = vsyncpa [#allocation12], 1 }
 0x4be   :  { %1545 = vsyncpa [#allocation4], 1 }
 0x4bf   :  { %1546 = vsyncpa [#allocation15], 1 }

</bundles_post_ra>
